<compile_context>
chip_gen: v5e
topology: v5e:2x2
jax: 0.10.0
libtpu: 0.0.40
codegen_flags: <defaults>
</compile_context>

<pallas_src>
import functools

import numpy as np
import jax
import jax.numpy as jnp
from jax.experimental import pallas as pl
from jax.experimental.pallas import tpu as pltpu


def _round_up(x, m):
    return ((x + m - 1) // m) * m


# ---------------------------------------------------------------------------
# Kernel
# ---------------------------------------------------------------------------
def _noise_injection_kernel(x_ref, noise_ref, w_ref, b_ref, out_ref, act_ref,
                            *, n_layers, hp):
    """One batch tile of the full MLP.

    x_ref     : (tb, RB)              unsplit input: [hidden | noise | 0-pad]
    noise_ref : (tb, RB - HP)         [noise | 0-pad]
    w_ref     : (n_layers+1, RB, C)   stacked, zero-padded weights (resident)
    b_ref     : (n_layers+1, C)       zero-padded biases, f32 (resident)
    out_ref   : (tb, C)               lane-dense output slab
    act_ref   : (tb, RB)              VMEM scratch: [hidden_pad(HP) | noise | 0]
    """
    f32 = jnp.float32

    # Noise (and trailing zero) lanes written once per tile; every later layer
    # is then a single stacked matmul on act_ref.
    act_ref[:, hp:] = noise_ref[...]

    # Layer 0: x already has the [hidden | noise] layout -> one MXU matmul.
    h = jnp.dot(x_ref[...], w_ref[0], preferred_element_type=f32)
    h = jnp.maximum(h + b_ref[0:1, :], 0.0)
    act_ref[:, :hp] = h[:, :hp].astype(act_ref.dtype)

    # Remaining hidden layers: relu(concat(hidden, noise) @ W + b).
    for l in range(1, n_layers):
        h = jnp.dot(act_ref[...], w_ref[l], preferred_element_type=f32)
        h = jnp.maximum(h + b_ref[l:l + 1, :], 0.0)
        act_ref[:, :hp] = h[:, :hp].astype(act_ref.dtype)

    # Output layer (no activation); padded columns carry zeros.
    o = jnp.dot(act_ref[...], w_ref[n_layers], preferred_element_type=f32)
    out_ref[...] = (o + b_ref[n_layers:n_layers + 1, :]).astype(out_ref.dtype)


# ---------------------------------------------------------------------------
# Parameter packing (wrapper-side, done once)
# ---------------------------------------------------------------------------
def pack_noise_injection_params(weights, biases, *, cond_dim, other_dim,
                                nodes_per_layer, output_dim):
    """Pack concat-form Linear params into two zero-padded slabs.

    weights[l] : (in_l + other_dim, out_l) with in_0 = cond_dim, in_l = nodes[l-1]
                 (output layer: in = nodes[-1], out = output_dim)
    biases[l]  : (out_l,)
    """
    nodes = list(nodes_per_layer)
    assert len(nodes) >= 1, "NoiseInjection requires at least one hidden layer"
    n_layers = len(nodes)
    assert len(weights) == n_layers + 1 and len(biases) == n_layers + 1

    hp = _round_up(max(nodes), 128)                       # padded hidden width
    c = max(hp, _round_up(output_dim, 128))               # lane-dense output width
    rb = _round_up(max(cond_dim + other_dim, hp + other_dim), 8)  # padded K width

    w_slab = np.zeros((n_layers + 1, rb, c), np.float32)
    b_slab = np.zeros((n_layers + 1, c), np.float32)

    in_hidden = [cond_dim] + nodes          # hidden-part input dim per layer
    out_dims = nodes + [output_dim]
    for l, (in_h, out_d) in enumerate(zip(in_hidden, out_dims)):
        w = np.asarray(weights[l], np.float32)
        b = np.asarray(biases[l], np.float32)
        assert w.shape == (in_h + other_dim, out_d)
        if l == 0:
            # Layer 0 multiplies the unsplit x ([hidden(cond) | noise]).
            w_slab[l, :in_h + other_dim, :out_d] = w
        else:
            w_slab[l, :in_h, :out_d] = w[:in_h]                # hidden part
            w_slab[l, hp:hp + other_dim, :out_d] = w[in_h:]    # noise part
        b_slab[l, :out_d] = b

    return {
        "w_slab": jnp.asarray(w_slab),
        "b_slab": jnp.asarray(b_slab),
        "cond_dim": cond_dim,
        "other_dim": other_dim,
        "nodes": tuple(nodes),
        "output_dim": output_dim,
        "hp": hp,
        "rb": rb,
        "c": c,
    }


# ---------------------------------------------------------------------------
# Forward wrapper
# ---------------------------------------------------------------------------
def noise_injection_forward(x, packed, *, use_bf16=False, batch_tile=256):
    hp, rb, c = packed["hp"], packed["rb"], packed["c"]
    cond_dim, other_dim = packed["cond_dim"], packed["other_dim"]
    n_layers = len(packed["nodes"])
    output_dim = packed["output_dim"]

    batch, feat = x.shape
    assert feat == cond_dim + other_dim

    cdt = jnp.bfloat16 if use_bf16 else jnp.float32

    # Batch tiling: tile is a multiple of 8; batch padded to whole tiles.
    tb = min(batch_tile, _round_up(batch, 8))
    bp = _round_up(batch, tb)

    xc = x.astype(cdt)
    # Unsplit x, zero-padded on lanes (-> RB) and rows (-> bp).
    x_padded = jnp.zeros((bp, rb), cdt).at[:batch, :feat].set(xc)
    # Noise lanes (+ trailing zero lanes) that sit at lane offset HP in scratch.
    noise_padded = jnp.zeros((bp, rb - hp), cdt).at[:batch, :other_dim].set(
        xc[:, cond_dim:])

    w_slab = packed["w_slab"].astype(cdt)
    b_slab = packed["b_slab"]            # bias add / accumulation stay f32

    kernel = functools.partial(_noise_injection_kernel, n_layers=n_layers, hp=hp)

    flops = 2 * bp * rb * c * (n_layers + 1)
    bytes_accessed = (x_padded.size * x_padded.dtype.itemsize
                      + noise_padded.size * noise_padded.dtype.itemsize
                      + w_slab.size * w_slab.dtype.itemsize
                      + b_slab.size * b_slab.dtype.itemsize
                      + bp * c * 4)

    out = pl.pallas_call(
        kernel,
        out_shape=jax.ShapeDtypeStruct((bp, c), jnp.float32),
        grid_spec=pltpu.PrefetchScalarGridSpec(
            num_scalar_prefetch=0,
            grid=(bp // tb,),
            in_specs=[
                pl.BlockSpec((tb, rb), lambda i: (i, 0)),                  # x tile
                pl.BlockSpec((tb, rb - hp), lambda i: (i, 0)),             # noise tile
                pl.BlockSpec((n_layers + 1, rb, c), lambda i: (0, 0, 0)),  # weights (resident)
                pl.BlockSpec((n_layers + 1, c), lambda i: (0, 0)),         # biases  (resident)
            ],
            out_specs=pl.BlockSpec((tb, c), lambda i: (i, 0)),
            scratch_shapes=[pltpu.VMEM((tb, rb), cdt)],
        ),
        compiler_params=pltpu.CompilerParams(
            dimension_semantics=("parallel",)),
        cost_estimate=pl.CostEstimate(
            flops=int(flops), transcendentals=0,
            bytes_accessed=int(bytes_accessed)),
    )(x_padded, noise_padded, w_slab, b_slab)

    return out[:batch, :output_dim]


# ---------------------------------------------------------------------------
# Deterministic init (mimics torch.nn.Linear: U(-1/sqrt(fan_in), 1/sqrt(fan_in)))
# Weights stored in concat form, (in_features, out_features) layout.
# ---------------------------------------------------------------------------
def init_params(key, cond_dim, other_dim, nodes_per_layer, output_dim):
    weights, biases = [], []
    in_dims = [cond_dim] + list(nodes_per_layer)
    out_dims = list(nodes_per_layer) + [output_dim]
    for in_h, out_d in zip(in_dims, out_dims):
        fan_in = in_h + other_dim
        bound = 1.0 / float(np.sqrt(fan_in))
        key, k1, k2 = jax.random.split(key, 3)
        w = jax.random.uniform(k1, (fan_in, out_d), jnp.float32, -bound, bound)
        b = jax.random.uniform(k2, (out_d,), jnp.float32, -bound, bound)
        weights.append(w)
        biases.append(b)
    return weights, biases


# Pure-JAX reference mirroring the torch forward (concat each layer).
def reference_forward(x, weights, biases, cond_dim):
    hidden = x[:, :cond_dim]
    noise = x[:, cond_dim:]
    for w, b in zip(weights[:-1], biases[:-1]):
        hidden = jnp.maximum(jnp.concatenate([hidden, noise], axis=1) @ w + b, 0.0)
    return jnp.concatenate([hidden, noise], axis=1) @ weights[-1] + biases[-1]


if __name__ == "__main__":
    # nn_spec-equivalent configuration (small, synthetic)
    cond_dim = 16
    other_dim = 8
    nodes_per_layer = [32, 32]
    output_dim = 16
    batch = 8

    key = jax.random.PRNGKey(0)
    key, kx = jax.random.split(key)
    # x = [hidden_repr | noise] along the feature axis, as in the torch module
    x = jax.random.normal(kx, (batch, cond_dim + other_dim), jnp.float32)

    weights, biases = init_params(key, cond_dim, other_dim, nodes_per_layer, output_dim)
    packed = pack_noise_injection_params(
        weights, biases, cond_dim=cond_dim, other_dim=other_dim,
        nodes_per_layer=nodes_per_layer, output_dim=output_dim)

    ref = reference_forward(x, weights, biases, cond_dim)

    # f32 path (bit-faithful to the torch fp32 forward)
    out = jax.block_until_ready(noise_injection_forward(x, packed, use_bf16=False))
    assert out.shape == (batch, output_dim)
    assert jnp.allclose(out, ref, atol=1e-4, rtol=1e-4)

    # bf16-operand path (MXU-native; f32 accumulation) — looser tolerance
    out_bf16 = jax.block_until_ready(noise_injection_forward(x, packed, use_bf16=True))
    assert out_bf16.shape == (batch, output_dim)
    assert jnp.allclose(out_bf16, ref, atol=2e-1, rtol=2e-1)

    print("KERNEL_OK")
</pallas_src>

<mosaic_0001>
module attributes {stable_mosaic.version = 11 : i64} {
  func.func @_noise_injection_kernel(%arg0: i32, %arg1: memref<8x136xf32, #tpu.memory_space<vmem>>, %arg2: memref<8x8xf32, #tpu.memory_space<vmem>>, %arg3: memref<3x136x128xf32, #tpu.memory_space<vmem>>, %arg4: memref<3x128xf32, #tpu.memory_space<vmem>>, %arg5: memref<8x128xf32, #tpu.memory_space<vmem>>, %arg6: memref<8x136xf32, #tpu.memory_space<vmem>>) attributes {dimension_semantics = [#tpu.dimension_semantics<parallel>], iteration_bounds = array<i64: 1>, scalar_prefetch = 0 : i64, scratch_operands = 1 : i64, tpu.core_type = #tpu.core_type<tc>, window_params = [{transform_indices = @transform_0, window_bounds = array<i64: 8, 136>}, {transform_indices = @transform_1, window_bounds = array<i64: 8, 8>}, {pipeline_mode = #tpu.pipeline_mode<synchronous>, transform_indices = @transform_2, window_bounds = array<i64: 3, 136, 128>}, {pipeline_mode = #tpu.pipeline_mode<synchronous>, transform_indices = @transform_3, window_bounds = array<i64: 3, 128>}, {transform_indices = @transform_4, window_bounds = array<i64: 8, 128>}]} {
    %c0 = arith.constant 0 : index
    %c0_0 = arith.constant 0 : index
    %0 = vector.load %arg2[%c0, %c0_0] : memref<8x8xf32, #tpu.memory_space<vmem>>, vector<8x8xf32>
    %c0_1 = arith.constant 0 : index
    %c128 = arith.constant 128 : index
    %1 = vector.load %arg6[%c0_1, %c128] : memref<8x136xf32, #tpu.memory_space<vmem>>, vector<8x8xf32>
    tpu.vector_store %arg6[%c0_1, %c128], %0 {strides = array<i32>} : memref<8x136xf32, #tpu.memory_space<vmem>>, vector<8x8xf32>,
    %c0_2 = arith.constant 0 : index
    %c0_3 = arith.constant 0 : index
    %2 = vector.load %arg1[%c0_2, %c0_3] : memref<8x136xf32, #tpu.memory_space<vmem>>, vector<8x136xf32>
    %c0_4 = arith.constant 0 : index
    %c0_5 = arith.constant 0 : index
    %c0_6 = arith.constant 0 : index
    %3 = vector.load %arg3[%c0_4, %c0_5, %c0_6] : memref<3x136x128xf32, #tpu.memory_space<vmem>>, vector<1x136x128xf32>
    %4 = vector.shape_cast %3 : vector<1x136x128xf32> to vector<136x128xf32>
    %cst = arith.constant dense<0.000000e+00> : vector<8x128xf32>
    %5 = tpu.matmul %2, %4, %cst {dimension_numbers = #tpu.dot_dimension_numbers<[1], [0], [0], [1], [0, 0, 1, 1], [], []>} : vector<8x136xf32>, vector<136x128xf32>, vector<8x128xf32> -> vector<8x128xf32>
    %c0_7 = arith.constant 0 : index
    %c0_8 = arith.constant 0 : index
    %6 = vector.load %arg4[%c0_7, %c0_8] : memref<3x128xf32, #tpu.memory_space<vmem>>, vector<1x128xf32>
    %7 = vector.broadcast %6 : vector<1x128xf32> to vector<8x128xf32>
    %8 = arith.addf %5, %7 : vector<8x128xf32>
    %cst_9 = arith.constant 0.000000e+00 : f32
    %9 = vector.broadcast %cst_9 : f32 to vector<8x128xf32>
    %10 = arith.maximumf %8, %9 : vector<8x128xf32>
    %c0_10 = arith.constant 0 : index
    %c0_11 = arith.constant 0 : index
    %11 = vector.load %arg6[%c0_10, %c0_11] : memref<8x136xf32, #tpu.memory_space<vmem>>, vector<8x128xf32>
    tpu.vector_store %arg6[%c0_10, %c0_11], %10 {strides = array<i32>} : memref<8x136xf32, #tpu.memory_space<vmem>>, vector<8x128xf32>,
    %c0_12 = arith.constant 0 : index
    %c0_13 = arith.constant 0 : index
    %12 = vector.load %arg6[%c0_12, %c0_13] : memref<8x136xf32, #tpu.memory_space<vmem>>, vector<8x136xf32>
    %c1 = arith.constant 1 : index
    %c0_14 = arith.constant 0 : index
    %c0_15 = arith.constant 0 : index
    %13 = vector.load %arg3[%c1, %c0_14, %c0_15] : memref<3x136x128xf32, #tpu.memory_space<vmem>>, vector<1x136x128xf32>
    %14 = vector.shape_cast %13 : vector<1x136x128xf32> to vector<136x128xf32>
    %cst_16 = arith.constant dense<0.000000e+00> : vector<8x128xf32>
    %15 = tpu.matmul %12, %14, %cst_16 {dimension_numbers = #tpu.dot_dimension_numbers<[1], [0], [0], [1], [0, 0, 1, 1], [], []>} : vector<8x136xf32>, vector<136x128xf32>, vector<8x128xf32> -> vector<8x128xf32>
    %c1_17 = arith.constant 1 : index
    %c0_18 = arith.constant 0 : index
    %16 = vector.load %arg4[%c1_17, %c0_18] : memref<3x128xf32, #tpu.memory_space<vmem>>, vector<1x128xf32>
    %17 = vector.broadcast %16 : vector<1x128xf32> to vector<8x128xf32>
    %18 = arith.addf %15, %17 : vector<8x128xf32>
    %cst_19 = arith.constant 0.000000e+00 : f32
    %19 = vector.broadcast %cst_19 : f32 to vector<8x128xf32>
    %20 = arith.maximumf %18, %19 : vector<8x128xf32>
    %c0_20 = arith.constant 0 : index
    %c0_21 = arith.constant 0 : index
    %21 = vector.load %arg6[%c0_20, %c0_21] : memref<8x136xf32, #tpu.memory_space<vmem>>, vector<8x128xf32>
    tpu.vector_store %arg6[%c0_20, %c0_21], %20 {strides = array<i32>} : memref<8x136xf32, #tpu.memory_space<vmem>>, vector<8x128xf32>,
    %c0_22 = arith.constant 0 : index
    %c0_23 = arith.constant 0 : index
    %22 = vector.load %arg6[%c0_22, %c0_23] : memref<8x136xf32, #tpu.memory_space<vmem>>, vector<8x136xf32>
    %c2 = arith.constant 2 : index
    %c0_24 = arith.constant 0 : index
    %c0_25 = arith.constant 0 : index
    %23 = vector.load %arg3[%c2, %c0_24, %c0_25] : memref<3x136x128xf32, #tpu.memory_space<vmem>>, vector<1x136x128xf32>
    %24 = vector.shape_cast %23 : vector<1x136x128xf32> to vector<136x128xf32>
    %cst_26 = arith.constant dense<0.000000e+00> : vector<8x128xf32>
    %25 = tpu.matmul %22, %24, %cst_26 {dimension_numbers = #tpu.dot_dimension_numbers<[1], [0], [0], [1], [0, 0, 1, 1], [], []>} : vector<8x136xf32>, vector<136x128xf32>, vector<8x128xf32> -> vector<8x128xf32>
    %c2_27 = arith.constant 2 : index
    %c0_28 = arith.constant 0 : index
    %26 = vector.load %arg4[%c2_27, %c0_28] : memref<3x128xf32, #tpu.memory_space<vmem>>, vector<1x128xf32>
    %27 = vector.broadcast %26 : vector<1x128xf32> to vector<8x128xf32>
    %28 = arith.addf %25, %27 : vector<8x128xf32>
    %c0_29 = arith.constant 0 : index
    %c0_30 = arith.constant 0 : index
    %29 = vector.load %arg5[%c0_29, %c0_30] : memref<8x128xf32, #tpu.memory_space<vmem>>, vector<8x128xf32>
    tpu.vector_store %arg5[%c0_29, %c0_30], %28 {strides = array<i32>} : memref<8x128xf32, #tpu.memory_space<vmem>>, vector<8x128xf32>,
    return
  }
  func.func @transform_0(%arg0: i32) -> (i32, i32) {
    %c0_i32 = arith.constant 0 : i32
    %c0_i32_0 = arith.constant 0 : i32
    return %arg0, %c0_i32 : i32, i32
  }
  func.func @transform_1(%arg0: i32) -> (i32, i32) {
    %c0_i32 = arith.constant 0 : i32
    %c0_i32_0 = arith.constant 0 : i32
    return %arg0, %c0_i32 : i32, i32
  }
  func.func @transform_2(%arg0: i32) -> (i32, i32, i32) {
    %c0_i32 = arith.constant 0 : i32
    %c0_i32_0 = arith.constant 0 : i32
    %c0_i32_1 = arith.constant 0 : i32
    %c0_i32_2 = arith.constant 0 : i32
    return %c0_i32, %c0_i32_0, %c0_i32_1 : i32, i32, i32
  }
  func.func @transform_3(%arg0: i32) -> (i32, i32) {
    %c0_i32 = arith.constant 0 : i32
    %c0_i32_0 = arith.constant 0 : i32
    %c0_i32_1 = arith.constant 0 : i32
    return %c0_i32, %c0_i32_0 : i32, i32
  }
  func.func @transform_4(%arg0: i32) -> (i32, i32) {
    %c0_i32 = arith.constant 0 : i32
    %c0_i32_0 = arith.constant 0 : i32
    return %arg0, %c0_i32 : i32, i32
  }
}

</mosaic_0001>

<bundles_post_ra>
// kernel: tpu_custom_call.1
= control target key start
LH: loop header
LB: loop body
LE: loop exit
PB: predicated region body
PF: predicated region fallthrough
CT: control target
= control target key end

     0   :  { %9 = vsyncpa [#allocation4], 0  ;;  %s488_s0 = inlined_call_operand.hbm [shape: f32[8,136], index: 0, kind: input, shape index: {}]   ;;  %s489_s1 = inlined_call_operand.hbm [shape: f32[8,8], index: 1, kind: input, shape index: {}]   ;;  %s490_s2 = inlined_call_operand.hbm [shape: f32[3,136,128], index: 2, kind: input, shape index: {}]   ;;  %s491_s3 = inlined_call_operand.hbm [shape: f32[3,128], index: 3, kind: input, shape index: {}]   ;;  %s492_s4 = inlined_call_operand.hbm [shape: f32[8,128], index: 4, kind: output, shape index: {}]  }
   0x1   :  { %10 = vsyncpa [#allocation7], 0 }
   0x2   :  { %11 = vsyncpa [#allocation10], 0  ;;  %s29_s17 = sshll.u32 %s489_s1, 4  ;;  %s30_s17 = int_to_ptr.hbm [resolvable:$true] %s29_s17 }
   0x3   :  { %12 = vsyncpa [#allocation5], 0  ;;  %s437_s18 = smov [#allocation6]   ;;  %s18_s22 = sshll.u32 %s488_s0, 4  ;;  %s19_s22 = int_to_ptr.hbm [resolvable:$true] %s18_s22 }
   0x4   :  { %s31_s19 = sshll.u32 %s437_s18, 4  ;;  %s438_s23 = smov [#allocation3]   ;;  %s32_s19 = int_to_ptr.vmem [resolvable:$true] %s31_s19 }
   0x5   :  { %34 = dma.hbm_to_vmem [thread:$0]  %s30_s17, 128, %s32_s19, [#allocation7]  }
   0x6   :  { %s20_s24 = sshll.u32 %s438_s23, 4  ;;  %s39_s27 = sshll.u32 %s490_s2, 4  ;;  %s21_s24 = int_to_ptr.vmem [resolvable:$true] %s20_s24  ;;  %s40_s27 = int_to_ptr.hbm [resolvable:$true] %s39_s27 }
   0x7   :  { %23 = dma.hbm_to_vmem [thread:$0]  %s19_s22, 256, %s21_s24, [#allocation4]  }
   0x8   :  { %s439_s1 = smov [#allocation8]   ;;  %s53_s5 = sshll.u32 %s491_s3, 4  ;;  %s54_s5 = int_to_ptr.hbm [resolvable:$true] %s53_s5 }
   0x9   :  { %s41_s28 = sshll.u32 %s439_s1, 4  ;;  %s440_s6 = smov 128   ;;  %s42_s28 = int_to_ptr.vmem [resolvable:$true] %s41_s28 }
   0xa   :  { %s441_s0 = smov 8   ;;  %s442_s7 = smov [#allocation9]  }
   0xb   :  { %47 = dma.hbm_to_vmem [thread:$0]  %s40_s27, 6528, %s42_s28, [#allocation7], %s440_s6, %s440_s6, %s441_s0  }
   0xc   :  { %s55_s8 = sshll.u32 %s442_s7, 4  ;;  %s56_s8 = int_to_ptr.vmem [resolvable:$true] %s55_s8 }
   0xd   :  { %58 = dma.hbm_to_vmem [thread:$0]  %s54_s5, 64, %s56_s8, [#allocation10]  }
   0xe   :  { %429 = dma.done.wait [#allocation4], 256  }
   0xf   :  { %430 = vsyncadd [#allocation4], 4294967040 }
  0x10   :  { %431 = dma.done.wait [#allocation7], 6656  }
  0x11   :  { %432 = vsyncadd [#allocation7], 4294960640 }
  0x12   :  { %433 = dma.done.wait [#allocation10], 64  }
  0x13   :  { %434 = vsyncadd [#allocation10], 4294967232  ;;  %v95_v0 = vld [vmem:[#allocation8 + $0x78] sm:$0xff]  ;;  %v94_v1 = vld [vmem:[#allocation8 + $0x70] sm:$0xff]  ;;  %vm76_vm0 = vcmask 64512   ;;  %s443_s2 = smov [#allocation11]  }
  0x14   :  { %102 = vmatpush.msra.mxu0 %v95_v0  ;;  %v93_v2 = vld [vmem:[#allocation8 + $0x68] sm:$0xff]  ;;  %v92_v3 = vld [vmem:[#allocation8 + $0x60] sm:$0xff]  ;;  %v75_v5 = vld [vmem:[#allocation6] sm:$0xff]  ;;  %s282_s3 = sshll.u32 %s443_s2, 4  ;;  %s284_s11 = sshll.u32 %s492_s4, 4  ;;  %s283_s3 = int_to_ptr.vmem [resolvable:$true] %s282_s3  ;;  %s285_s11 = int_to_ptr.hbm [resolvable:$true] %s284_s11 }
  0x15   :  { %v96_v4 = vld [vmem:[#allocation8 + $0x80] sm:$0xff]  ;;  %v79_v6 = vld [vmem:[#allocation3 + $0x8] sm:$0xff]  ;;  %v91_v7 = vld [vmem:[#allocation8 + $0x58] sm:$0xff]  ;;  %77 = vst.msk [vmem:[#allocation2 + $0x8] sm:$0xff] %vm76_vm0, %v75_v5 }
  0x16   :  { %103 = vmatpush.msra.mxu0 %v94_v1  ;;  %137 = vmatpush.msra.mxu3 %v96_v4  ;;  %v162_v8 = vld [vmem:[#allocation8 + $0x100] sm:$0xff]  ;;  %v161_v9 = vld [vmem:[#allocation8 + $0xf8] sm:$0xff]  ;;  %v90_v10 = vld [vmem:[#allocation8 + $0x50] sm:$0xff] }
  0x17   :  { %296 = vmatmul.msk.f32.vlgmr.msra.gmra.mxu3 %vm76_vm0, %v79_v6  ;;  %169 = vmatpush.msra.mxu2 %v162_v8  ;;  %v160_v11 = vld [vmem:[#allocation8 + $0xf0] sm:$0xff]  ;;  %v89_v12 = vld [vmem:[#allocation8 + $0x48] sm:$0xff]  ;;  %v88_v14 = vld [vmem:[#allocation8 + $0x40] sm:$0xff] }
  0x18   :  { %104 = vmatpush.msra.mxu0 %v93_v2  ;;  %v159_v13 = vld [vmem:[#allocation8 + $0xe8] sm:$0xff]  ;;  %v158_v15 = vld [vmem:[#allocation8 + $0xe0] sm:$0xff]  ;;  %v87_v16 = vld [vmem:[#allocation8 + $0x38] sm:$0xff] }
  0x19   :  { %170 = vmatpush.msra.mxu2 %v161_v9  ;;  %v157_v17 = vld [vmem:[#allocation8 + $0xd8] sm:$0xff]  ;;  %v86_v18 = vld [vmem:[#allocation8 + $0x30] sm:$0xff]  ;;  %v85_v20 = vld [vmem:[#allocation8 + $0x28] sm:$0xff] }
  0x1a   :  { %105 = vmatpush.msra.mxu0 %v92_v3  ;;  %v156_v19 = vld [vmem:[#allocation8 + $0xd0] sm:$0xff]  ;;  %v155_v21 = vld [vmem:[#allocation8 + $0xc8] sm:$0xff]  ;;  %v84_v22 = vld [vmem:[#allocation8 + $0x20] sm:$0xff] }
  0x1b   :  { %171 = vmatpush.msra.mxu2 %v160_v11  ;;  %v83_v23 = vld [vmem:[#allocation8 + $0x18] sm:$0xff]  ;;  %v82_v24 = vld [vmem:[#allocation8 + $0x10] sm:$0xff]  ;;  %v81_v25 = vld [vmem:[#allocation8 + $0x8] sm:$0xff] }
  0x1c   :  { %106 = vmatpush.msra.mxu0 %v91_v7  ;;  %v80_v26 = vld [vmem:[#allocation8] sm:$0xff]  ;;  %v78_v27 = vld [vmem:[#allocation3] sm:$0xff]  ;;  %v153_v29 = vld [vmem:[#allocation8 + $0xb8] sm:$0xff] }
  0x1d   :  { %172 = vmatpush.msra.mxu2 %v159_v13  ;;  %v154_v28 = vld [vmem:[#allocation8 + $0xc0] sm:$0xff]  ;;  %v152_v30 = vld [vmem:[#allocation8 + $0xb0] sm:$0xff]  ;;  %v151_v31 = vld [vmem:[#allocation8 + $0xa8] sm:$0xff] }
  0x1e   :  { %107 = vmatpush.msra.mxu0 %v90_v10  ;;  %v150_v32 = vld [vmem:[#allocation8 + $0xa0] sm:$0xff]  ;;  %v149_v33 = vld [vmem:[#allocation8 + $0x98] sm:$0xff]  ;;  %v148_v34 = vld [vmem:[#allocation8 + $0x90] sm:$0xff] }
  0x1f   :  { %173 = vmatpush.msra.mxu2 %v158_v15  ;;  %v163_v35 = vld [vmem:[#allocation8 + $0x108] sm:$0xff]  ;;  %v145_v37 = vld [vmem:[#allocation2 + $0x8] sm:$0xff]  ;;  %v227_v40 = vld [vmem:[#allocation8 + $0x178] sm:$0xff] }
  0x20   :  { %108 = vmatpush.msra.mxu0 %v89_v12  ;;  %v147_v36 = vld [vmem:[#allocation8 + $0x88] sm:$0xff]  ;;  %204 = vmatpush.msrb.mxu3 %v163_v35  ;;  %v228_v39 = vld [vmem:[#allocation8 + $0x180] sm:$0xff]  ;;  %v226_v41 = vld [vmem:[#allocation8 + $0x170] sm:$0xff] }
  0x21   :  { %174 = vmatpush.msra.mxu2 %v157_v17  ;;  %v229_v38 = vld [vmem:[#allocation8 + $0x188] sm:$0xff]  ;;  %297 = vmatmul.msk.f32.vlgmr.msrb.gmra.mxu3 %vm76_vm0, %v145_v37  ;;  %v224_v43 = vld [vmem:[#allocation8 + $0x160] sm:$0xff]  ;;  %v223_v44 = vld [vmem:[#allocation8 + $0x158] sm:$0xff] }
  0x22   :  { %109 = vmatpush.msra.mxu0 %v88_v14  ;;  %236 = vmatpush.msra.mxu1 %v229_v38  ;;  %v225_v42 = vld [vmem:[#allocation8 + $0x168] sm:$0xff]  ;;  %v222_v45 = vld [vmem:[#allocation8 + $0x150] sm:$0xff]  ;;  %v306_v46 = vld [vmem:[#allocation9] ss:$0 sm:$0xff] }
  0x23   :  { %175 = vmatpush.msra.mxu2 %v156_v19  ;;  %v221_v52 = vld [vmem:[#allocation8 + $0x148] sm:$0xff]  ;;  %v220_v53 = vld [vmem:[#allocation8 + $0x140] sm:$0xff]  ;;  %v219_v54 = vld [vmem:[#allocation8 + $0x138] sm:$0xff] }
  0x24   :  { %110 = vmatpush.msra.mxu0 %v87_v16  ;;  %237 = vmatpush.msra.mxu1 %v228_v39  ;;  %v218_v55 = vld [vmem:[#allocation8 + $0x130] sm:$0xff]  ;;  %v217_v56 = vld [vmem:[#allocation8 + $0x128] sm:$0xff]  ;;  %v216_v58 = vld [vmem:[#allocation8 + $0x120] sm:$0xff] }
  0x25   :  { %176 = vmatpush.msra.mxu2 %v155_v21  ;;  %v230_v57 = vld [vmem:[#allocation8 + $0x190] sm:$0xff]  ;;  %v215_v59 = vld [vmem:[#allocation8 + $0x118] sm:$0xff] }
  0x26   :  { %111 = vmatpush.msra.mxu0 %v86_v18  ;;  %238 = vmatpush.msra.mxu1 %v227_v40  ;;  %v214_v60 = vld [vmem:[#allocation8 + $0x110] sm:$0xff]  ;;  %v307_v61 = vld [vmem:[#allocation9 + $0x1] ss:$0 sm:$0xff]  ;;  %v308_v3 = vld [vmem:[#allocation9 + $0x2] ss:$0 sm:$0xff] }
  0x27   :  { %177 = vmatpush.msra.mxu2 %v154_v28  ;;  %271 = vmatpush.msra.mxu3 %v230_v57 }
  0x28   :  { %112 = vmatpush.msra.mxu0 %v85_v20  ;;  %239 = vmatpush.msra.mxu1 %v226_v41 }
  0x29   :  { %178 = vmatpush.msra.mxu2 %v153_v29  ;;  %298 = vmatmul.msk.f32.vlgmr.msra.gmra.mxu3 %vm76_vm0, %v145_v37 }
  0x2a   :  { %113 = vmatpush.msra.mxu0 %v84_v22  ;;  %240 = vmatpush.msra.mxu1 %v225_v42 }
  0x2b   :  { %179 = vmatpush.msra.mxu2 %v152_v30 }
  0x2c   :  { %114 = vmatpush.msra.mxu0 %v83_v23  ;;  %241 = vmatpush.msra.mxu1 %v224_v43 }
  0x2d   :  { %180 = vmatpush.msra.mxu2 %v151_v31 }
  0x2e   :  { %115 = vmatpush.msra.mxu0 %v82_v24  ;;  %242 = vmatpush.msra.mxu1 %v223_v44 }
  0x2f   :  { %181 = vmatpush.msra.mxu2 %v150_v32 }
  0x30   :  { %116 = vmatpush.msra.mxu0 %v81_v25  ;;  %243 = vmatpush.msra.mxu1 %v222_v45 }
  0x31   :  { %182 = vmatpush.msra.mxu2 %v149_v33 }
  0x32   :  { %117 = vmatpush.msra.mxu0 %v80_v26  ;;  %244 = vmatpush.msra.mxu1 %v221_v52 }
  0x33   :  { %118 = vmatmul.f32.vlgmr.msra.gmra.mxu0 %v78_v27  ;;  %183 = vmatpush.msra.mxu2 %v148_v34 }
  0x34   :  { %245 = vmatpush.msra.mxu1 %v220_v53 }
  0x35   :  { %184 = vmatpush.msra.mxu2 %v147_v36 }
  0x36   :  { %246 = vmatpush.msra.mxu1 %v219_v54 }
  0x38   :  { %247 = vmatpush.msra.mxu1 %v218_v55 }
  0x3a   :  { %248 = vmatpush.msra.mxu1 %v217_v56 }
  0x3c   :  { %249 = vmatpush.msra.mxu1 %v216_v58 }
  0x3e   :  { %250 = vmatpush.msra.mxu1 %v215_v59 }
  0x40   :  { %251 = vmatpush.msra.mxu1 %v214_v60 }
  0x9a   :  { %v139_v48 = vpop.f32.mrf.mxu3 }
  0xa4   :  { %v206_v63 = vpop.f32.mrf.mxu3 }
  0xac   :  { %v273_v5 = vpop.f32.mrf.mxu3 }
  0xb0   :  { %v119_v47 = vpop.f32.mrf.mxu0 }
  0xb1   :  { %v120_v49 = vadd.f32 %v306_v46, %v119_v47 }
  0xb3   :  { %v140_v50 = vadd.f32 %v139_v48, %v120_v49 }
  0xb5   :  { %v142_v51 = vmax.f32 %v140_v50, 0.0 }
  0xb7   :  { %185 = vmatmul.f32.vlgmr.msra.gmra.mxu2 %v142_v51 }
 0x13a   :  { %v186_v62 = vpop.f32.mrf.mxu2 }
 0x13b   :  { %v187_v0 = vadd.f32 %v307_v61, %v186_v62 }
 0x13d   :  { %v207_v1 = vadd.f32 %v206_v63, %v187_v0 }
 0x13f   :  { %v209_v2 = vmax.f32 %v207_v1, 0.0 }
 0x141   :  { %252 = vmatmul.f32.vlgmr.msra.gmra.mxu1 %v209_v2 }
 0x1be   :  { %v253_v4 = vpop.f32.mrf.mxu1 }
 0x1bf   :  { %v254_v6 = vadd.f32 %v308_v3, %v253_v4 }
 0x1c1   :  { %v274_v7 = vadd.f32 %v273_v5, %v254_v6 }
 0x1c3   :  { %276 = vst [vmem:[#allocation11] sm:$0xff] %v274_v7 }
 0x1c4   :  { %287 = dma.vmem_to_hbm [thread:$0]  %s283_s3, 128, %s285_s11, [#allocation5]  }
 0x1c5   :  { %435 = dma.done.wait [#allocation5], 128  }
 0x1c6   :  { %436 = vsyncadd [#allocation5], 4294967168 }
 0x1c7   :  { %292 = vsyncpa [#allocation4], 1 }
 0x1c8   :  { %293 = vsyncpa [#allocation7], 1 }
 0x1c9   :  { %294 = vsyncpa [#allocation10], 1 }
 0x1ca   :  { %295 = vsyncpa [#allocation5], 1 }

</bundles_post_ra>
